<compile_context>
chip_gen: v7x
topology: tpu7x:2x2x1
jax: 0.10.0
libtpu: 0.0.40
codegen_flags: <defaults>
</compile_context>

<pallas_src>
import math

import jax
import jax.numpy as jnp
from jax.experimental import pallas as pl
from jax.experimental.pallas import tpu as pltpu


def _build_pe(max_len: int, d_model: int) -> jnp.ndarray:
    """Precompute the sinusoidal positional-encoding table [max_len, d_model]."""
    position = jnp.arange(0, max_len, dtype=jnp.float32)[:, None]            # [L, 1]
    div_term = jnp.exp(
        jnp.arange(0, d_model, 2, dtype=jnp.float32)
        * (-math.log(10000.0) / d_model)
    )                                                                         # [D/2]
    pe = jnp.zeros((max_len, d_model), dtype=jnp.float32)
    pe = pe.at[:, 0::2].set(jnp.sin(position * div_term))
    pe = pe.at[:, 1::2].set(jnp.cos(position * div_term))
    return pe


def _pos_enc_kernel_3d(scale_ref, pe_ref, x_ref, o_ref):
    # scale_ref: SMEM (1,1) f32; pe_ref: [TS, 1, D] f32; x_ref/o_ref: [TS, B, D].
    scale = scale_ref[0, 0]
    x = x_ref[...].astype(jnp.float32)
    pe = pe_ref[...]                               # broadcast along B (sublanes)
    o_ref[...] = (x + scale * pe).astype(o_ref.dtype)


def _pos_enc_kernel_2d(scale_ref, pe_ref, x_ref, o_ref):
    # scale_ref: SMEM (1,1) f32; pe_ref: [TS, B*D] f32; x_ref/o_ref: [TS, B*D].
    scale = scale_ref[0, 0]
    x = x_ref[...].astype(jnp.float32)
    o_ref[...] = (x + scale * pe_ref[...]).astype(o_ref.dtype)


def _tile_rows(n_rows: int, bytes_per_row: int,
               target_bytes: int = 4 * 1024 * 1024) -> int:
    """Rows per block targeting ~4 MiB; multiple of 8 or the full extent."""
    if n_rows * bytes_per_row <= target_bytes:
        return n_rows
    ts = max(8, (target_bytes // max(bytes_per_row, 1)) // 8 * 8)
    return int(min(ts, n_rows))


_COMPILER_PARAMS = pltpu.CompilerParams(
    dimension_semantics=("parallel",),        # shards the S-grid over v7x's 2 TCs
    vmem_limit_bytes=32 * 1024 * 1024,        # safe on v5e/v6e/v7x
)


def positional_encoding(x: jnp.ndarray, pe_table: jnp.ndarray,
                        scale) -> jnp.ndarray:
    """x: [S, B, D]; pe_table: [max_len, D] f32; scale: scalar parameter."""
    S, B, D = x.shape
    max_len = pe_table.shape[0]
    if S > max_len:
        raise ValueError(f"sequence length {S} exceeds max_len {max_len} of pe table")

    scale_arr = jnp.asarray(scale, jnp.float32).reshape(1, 1)
    itemsize = jnp.dtype(x.dtype).itemsize

    if D % 128 == 0:
        # Native [S, B, D] layout — no transposes, lane-dense stores (D ≡ 0 mod 128).
        pe3 = pe_table[:S].astype(jnp.float32)[:, None, :]          # [S, 1, D] f32
        ts = _tile_rows(S, B * D * itemsize)
        grid = (pl.cdiv(S, ts),)
        return pl.pallas_call(
            _pos_enc_kernel_3d,
            out_shape=jax.ShapeDtypeStruct((S, B, D), x.dtype),
            grid_spec=pltpu.PrefetchScalarGridSpec(
                num_scalar_prefetch=0,
                grid=grid,
                in_specs=[
                    pl.BlockSpec(memory_space=pltpu.MemorySpace.SMEM),   # scale
                    pl.BlockSpec((ts, 1, D), lambda s: (s, 0, 0)),        # pe
                    pl.BlockSpec((ts, B, D), lambda s: (s, 0, 0)),        # x
                ],
                out_specs=pl.BlockSpec((ts, B, D), lambda s: (s, 0, 0)),
            ),
            compiler_params=_COMPILER_PARAMS,
        )(scale_arr, pe3, x)

    # Small / non-lane-aligned D: copy-free contiguous reshape to [S, B*D]
    # (bitcast, no HBM pass) + prebuilt B-times-tiled f32 pe slab.
    L = B * D
    x2d = x.reshape(S, L)
    pe_slab = jnp.broadcast_to(
        pe_table[:S].astype(jnp.float32)[:, None, :], (S, B, D)
    ).reshape(S, L)                                                  # [S, B*D] f32
    ts = _tile_rows(S, L * (itemsize + 4))                           # x row + f32 pe row
    grid = (pl.cdiv(S, ts),)
    out2d = pl.pallas_call(
        _pos_enc_kernel_2d,
        out_shape=jax.ShapeDtypeStruct((S, L), x.dtype),
        grid_spec=pltpu.PrefetchScalarGridSpec(
            num_scalar_prefetch=0,
            grid=grid,
            in_specs=[
                pl.BlockSpec(memory_space=pltpu.MemorySpace.SMEM),   # scale
                pl.BlockSpec((ts, L), lambda s: (s, 0)),              # pe slab
                pl.BlockSpec((ts, L), lambda s: (s, 0)),              # x
            ],
            out_specs=pl.BlockSpec((ts, L), lambda s: (s, 0)),
        ),
        compiler_params=_COMPILER_PARAMS,
    )(scale_arr, pe_slab, x2d)
    return out2d.reshape(S, B, D)


if __name__ == "__main__":
    key = jax.random.PRNGKey(0)
    k1, k2, k3 = jax.random.split(key, 3)

    # --- Test 1: module-faithful small config (D < 128 -> flattened 2D path) --
    d_model, max_len, seq_len, batch = 32, 64, 8, 2
    x = jax.random.normal(k1, (seq_len, batch, d_model), dtype=jnp.float32)
    scale = jnp.float32(1.0)                       # nn.Parameter(torch.ones(1))
    pe_table = _build_pe(max_len, d_model)
    out = jax.block_until_ready(positional_encoding(x, pe_table, scale))
    ref = x + scale * pe_table[:seq_len][:, None, :]
    assert out.shape == (seq_len, batch, d_model)
    assert jnp.allclose(out, ref, atol=1e-6), "mismatch vs reference (test 1)"

    # --- Test 2: lane-aligned d_model (D % 128 == 0 -> native 3D path) -------
    d_model2, max_len2, seq_len2, batch2 = 128, 32, 9, 3
    x2 = jax.random.normal(k2, (seq_len2, batch2, d_model2), dtype=jnp.float32)
    scale2 = jnp.float32(0.37)
    pe_table2 = _build_pe(max_len2, d_model2)
    out2 = jax.block_until_ready(positional_encoding(x2, pe_table2, scale2))
    ref2 = x2 + scale2 * pe_table2[:seq_len2][:, None, :]
    assert out2.shape == (seq_len2, batch2, d_model2)
    assert jnp.allclose(out2, ref2, atol=1e-6), "mismatch vs reference (test 2)"

    # --- Test 3: non-128-aligned flattened length (exercises partial lanes) --
    d_model3, max_len3, seq_len3, batch3 = 48, 32, 5, 3
    x3 = jax.random.normal(k3, (seq_len3, batch3, d_model3), dtype=jnp.float32)
    scale3 = jnp.float32(2.5)
    pe_table3 = _build_pe(max_len3, d_model3)
    out3 = jax.block_until_ready(positional_encoding(x3, pe_table3, scale3))
    ref3 = x3 + scale3 * pe_table3[:seq_len3][:, None, :]
    assert out3.shape == (seq_len3, batch3, d_model3)
    assert jnp.allclose(out3, ref3, atol=1e-6), "mismatch vs reference (test 3)"

    print("KERNEL_OK")
</pallas_src>

<mosaic_0001>
module attributes {stable_mosaic.version = 11 : i64} {
  func.func @_pos_enc_kernel_2d(%arg0: i32, %arg1: memref<1x1xf32, #tpu.memory_space<smem>>, %arg2: memref<8x64xf32, #tpu.memory_space<vmem>>, %arg3: memref<8x64xf32, #tpu.memory_space<vmem>>, %arg4: memref<8x64xf32, #tpu.memory_space<vmem>>) attributes {dimension_semantics = [#tpu.dimension_semantics<parallel>], iteration_bounds = array<i64: 1>, scalar_prefetch = 0 : i64, scratch_operands = 0 : i64, tpu.core_type = #tpu.core_type<tc>, window_params = [{transform_indices = @transform_0, window_bounds = array<i64: 1, 1>}, {transform_indices = @transform_1, window_bounds = array<i64: 8, 64>}, {transform_indices = @transform_2, window_bounds = array<i64: 8, 64>}, {transform_indices = @transform_3, window_bounds = array<i64: 8, 64>}]} {
    %c0 = arith.constant 0 : index
    %c0_0 = arith.constant 0 : index
    %0 = memref.load %arg1[%c0, %c0_0] : memref<1x1xf32, #tpu.memory_space<smem>>
    %c0_1 = arith.constant 0 : index
    %c0_2 = arith.constant 0 : index
    %1 = vector.load %arg3[%c0_1, %c0_2] : memref<8x64xf32, #tpu.memory_space<vmem>>, vector<8x64xf32>
    %c0_3 = arith.constant 0 : index
    %c0_4 = arith.constant 0 : index
    %2 = vector.load %arg2[%c0_3, %c0_4] : memref<8x64xf32, #tpu.memory_space<vmem>>, vector<8x64xf32>
    %3 = vector.broadcast %0 : f32 to vector<8x64xf32>
    %4 = arith.mulf %3, %2 : vector<8x64xf32>
    %5 = arith.addf %1, %4 : vector<8x64xf32>
    %c0_5 = arith.constant 0 : index
    %c0_6 = arith.constant 0 : index
    %6 = vector.load %arg4[%c0_5, %c0_6] : memref<8x64xf32, #tpu.memory_space<vmem>>, vector<8x64xf32>
    tpu.vector_store %arg4[%c0_5, %c0_6], %5 {strides = array<i32>} : memref<8x64xf32, #tpu.memory_space<vmem>>, vector<8x64xf32>,
    return
  }
  func.func @transform_0(%arg0: i32) -> (i32, i32) {
    %c0_i32 = arith.constant 0 : i32
    %c0_i32_0 = arith.constant 0 : i32
    %c0_i32_1 = arith.constant 0 : i32
    return %c0_i32, %c0_i32_0 : i32, i32
  }
  func.func @transform_1(%arg0: i32) -> (i32, i32) {
    %c0_i32 = arith.constant 0 : i32
    %c0_i32_0 = arith.constant 0 : i32
    return %arg0, %c0_i32 : i32, i32
  }
  func.func @transform_2(%arg0: i32) -> (i32, i32) {
    %c0_i32 = arith.constant 0 : i32
    %c0_i32_0 = arith.constant 0 : i32
    return %arg0, %c0_i32 : i32, i32
  }
  func.func @transform_3(%arg0: i32) -> (i32, i32) {
    %c0_i32 = arith.constant 0 : i32
    %c0_i32_0 = arith.constant 0 : i32
    return %arg0, %c0_i32 : i32, i32
  }
}

</mosaic_0001>

<bundles_post_ra>
// kernel: tpu_custom_call.1
= control target key start
LH: loop header
LB: loop body
LE: loop exit
PB: predicated region body
PF: predicated region fallthrough
CT: control target
= control target key end

     0   :  { %9 = vsyncpa [#allocation4], 0  ;;  %s201_s0 = inlined_call_operand.<no memory space> [shape: f32[1,1], index: 0, kind: input, shape index: {}]   ;;  %s202_s1 = inlined_call_operand.hbm [shape: f32[8,64], index: 1, kind: input, shape index: {}]   ;;  %s203_s2 = inlined_call_operand.hbm [shape: f32[8,64], index: 2, kind: input, shape index: {}]   ;;  %s204_s3 = inlined_call_operand.hbm [shape: f32[8,64], index: 3, kind: output, shape index: {}]  }
   0x1   :  { %10 = vsyncpa [#allocation7], 0 }
   0x2   :  { %11 = vsyncpa [#allocation5], 0  ;;  %s139_s12 = smov [#allocation3]   ;;  %s140_s14 = smov [#allocation6]  }
   0x3   :  { %s20_s13 = sshll.u32 %s139_s12, 4  ;;  %s30_s15 = sshll.u32 %s140_s14, 4  ;;  %s21_s13 = int_to_ptr.vmem [resolvable:$true] %s20_s13  ;;  %s31_s15 = int_to_ptr.vmem [resolvable:$true] %s30_s15 }
   0x4   :  { %s67_s18 = scalar_lea.hbm %s202_s1, 128 }
   0x5   :  { %p68_p0 = scmp.ne.s32.totalorder %s202_s1, %s67_s18  ;;  %p71_p1 = scmp.lt.u32.totalorder %s67_s18, %s202_s1 }
   0x7   :  { %p73_p2 = pnand %p71_p1, %p68_p0 }
   0x9   :  { %76 = shalt.err (!%p73_p2)
}
   0xa   :  { %s77_s23 = scalar_lea.vmem %s21_s13, 128  ;;  %p82_p4 = scmp.lt.s32.totalorder %s21_s13, %s21_s13 }
   0xb   :  { %p78_p3 = scmp.ne.s32.totalorder %s21_s13, %s77_s23  ;;  %p83_p5 = scmp.lt.s32.totalorder %s77_s23, %s77_s23 }
   0xd   :  { %p84_p6 = por %p83_p5, %p82_p4 }
   0xf   :  { %p85_p7 = pnand %p84_p6, %p78_p3 }
  0x11   :  { %88 = shalt.err (!%p85_p7)
}
  0x12   :  { %23 = dma.hbm_to_vmem [thread:$0]  %s202_s1, 128, %s21_s13, [#allocation4]  }
  0x13   :  { %s89_s28 = scalar_lea.hbm %s203_s2, 128 }
  0x14   :  { %p90_p8 = scmp.ne.s32.totalorder %s203_s2, %s89_s28  ;;  %p93_p9 = scmp.lt.u32.totalorder %s89_s28, %s203_s2 }
  0x16   :  { %p95_p10 = pnand %p93_p9, %p90_p8 }
  0x18   :  { %98 = shalt.err (!%p95_p10)
}
  0x19   :  { %s99_s6 = scalar_lea.vmem %s31_s15, 128  ;;  %p104_p12 = scmp.lt.s32.totalorder %s31_s15, %s31_s15 }
  0x1a   :  { %p100_p11 = scmp.ne.s32.totalorder %s31_s15, %s99_s6  ;;  %p105_p13 = scmp.lt.s32.totalorder %s99_s6, %s99_s6 }
  0x1c   :  { %p106_p0 = por %p105_p13, %p104_p12 }
  0x1e   :  { %p107_p1 = pnand %p106_p0, %p100_p11 }
  0x20   :  { %110 = shalt.err (!%p107_p1)
}
  0x21   :  { %33 = dma.hbm_to_vmem [thread:$0]  %s203_s2, 128, %s31_s15, [#allocation7]  }
  0x22   :  { %133 = dma.done.wait [#allocation4], 128  }
  0x23   :  { %134 = vsyncadd [#allocation4], 4294967168 }
  0x24   :  { %135 = dma.done.wait [#allocation7], 128  }
  0x25   :  { %136 = vsyncadd [#allocation7], 4294967168  ;;  %v43_v0 = vstv %s201_s0  ;;  %v41_v1 = vld [vmem:[#allocation6] sm:$0xff]  ;;  %v42_v2 = vld [vmem:[#allocation3] sm:$0xff]  ;;  %s141_s10 = smov [#allocation8]   ;;  %vm46_vm0 = vcmask 523264  }
  0x26   :  { %s54_s11 = sshll.u32 %s141_s10, 4  ;;  %v44_v3 = vmul.f32 %v43_v0, %v42_v2  ;;  %s55_s11 = int_to_ptr.vmem [resolvable:$true] %s54_s11 }
  0x27   :  { %s111_s12 = scalar_lea.vmem %s55_s11, 128  ;;  %p116_p3 = scmp.lt.s32.totalorder %s55_s11, %s55_s11 }
  0x28   :  { %v45_v4 = vadd.f32 %v44_v3, %v41_v1  ;;  %p112_p2 = scmp.ne.s32.totalorder %s55_s11, %s111_s12  ;;  %p117_p4 = scmp.lt.s32.totalorder %s111_s12, %s111_s12 }
  0x2a   :  { %47 = vst.msk [vmem:[#allocation8] sm:$0xff] %vm46_vm0, %v45_v4  ;;  %p118_p5 = por %p117_p4, %p116_p3 }
  0x2c   :  { %p119_p6 = pnand %p118_p5, %p112_p2 }
  0x2e   :  { %122 = shalt.err (!%p119_p6)
}
  0x2f   :  { %s123_s0 = scalar_lea.hbm %s204_s3, 128 }
  0x30   :  { %p124_p7 = scmp.ne.s32.totalorder %s204_s3, %s123_s0  ;;  %p127_p8 = scmp.lt.u32.totalorder %s123_s0, %s204_s3 }
  0x32   :  { %p129_p9 = pnand %p127_p8, %p124_p7 }
  0x34   :  { %132 = shalt.err (!%p129_p9)
}
  0x35   :  { %57 = dma.vmem_to_hbm [thread:$0]  %s55_s11, 128, %s204_s3, [#allocation5]  }
  0x36   :  { %137 = dma.done.wait [#allocation5], 128  }
  0x37   :  { %138 = vsyncadd [#allocation5], 4294967168 }
  0x38   :  { %61 = vsyncpa [#allocation4], 1 }
  0x39   :  { %62 = vsyncpa [#allocation7], 1 }
  0x3a   :  { %63 = vsyncpa [#allocation5], 1 }

</bundles_post_ra>
